<compile_context>
chip_gen: v6e
topology: v6e:2x2x1
jax: 0.10.0
libtpu: 0.0.40
codegen_flags: <defaults>
</compile_context>

<pallas_src>
import numpy as np
import jax
import jax.numpy as jnp
from jax import lax
from jax.experimental import pallas as pl
from jax.experimental.pallas import tpu as pltpu


def net1_kernel(x_ref, w1_ref, b1_ref, w2_ref, b2_ref, fcw_ref, fcb_ref, out_ref):
    """One batch tile of TN images, batch on the lane (last) dimension.

    x_ref   : (TN, 36) f32   input images as stored in HBM, col = h*6 + w
    w1_ref  : (96, 36) bf16  conv1 unfolded, row = oc1*16 + (i*4 + j)
    b1_ref  : (96, 1)  f32
    w2_ref  : (64, 96) bf16  conv2 unfolded, row = (i2*2 + j2)*16 + oc2
    b2_ref  : (64, 1)  f32
    fcw_ref : (16, 1)  f32
    fcb_ref : (1, 1)   f32
    out_ref : (1, TN)  f32
    """
    x = x_ref[...].astype(jnp.bfloat16)                      # (TN, 36)

    # conv1 + ReLU on the MXU: contract x's last dim -> (96, TN), batch on lanes.
    h1 = lax.dot_general(w1_ref[...], x,
                         dimension_numbers=(((1,), (1,)), ((), ())),
                         preferred_element_type=jnp.float32)
    h1 = jnp.maximum(h1 + b1_ref[...], 0.0).astype(jnp.bfloat16)

    # conv2 + ReLU on the MXU: (64,96) @ (96,TN) -> (64,TN), f32 accumulation.
    h2 = jnp.dot(w2_ref[...], h1, preferred_element_type=jnp.float32)
    h2 = jnp.maximum(h2 + b2_ref[...], 0.0)

    # 2x2 max-pool: rows are spatial-position-major, so the four taps of each
    # channel sit 16 rows apart -> elementwise max of four vreg-aligned slabs.
    pooled = jnp.maximum(jnp.maximum(h2[0:16], h2[16:32]),
                         jnp.maximum(h2[32:48], h2[48:64]))   # (16, TN)

    # fc1 (16 -> 1): lane-broadcast multiply + cross-sublane (XLU) reduce.
    out_ref[...] = (jnp.sum(fcw_ref[...] * pooled, axis=0, keepdims=True)
                    + fcb_ref[...])


def prepare_net1_params(params):
    """One-time, numpy-only preprocessing of the PyTorch-layout parameters into
    dense MXU operands.  Call once per parameter set, outside jit."""
    w1, b1, w2, b2, fcw, fcb = (np.asarray(p, np.float32) for p in params)

    # conv1: (6,1,3,3) -> (96, 36) Toeplitz matrix acting on the flattened 6x6.
    w1_eff = np.zeros((96, 36), np.float32)
    for oc in range(6):
        for i in range(4):
            for j in range(4):
                for di in range(3):
                    for dj in range(3):
                        w1_eff[oc * 16 + i * 4 + j,
                               (i + di) * 6 + (j + dj)] = w1[oc, 0, di, dj]

    # conv2: (16,6,3,3) -> (64, 96) matrix acting on h1 rows (oc1*16 + i*4 + j).
    w2_eff = np.zeros((64, 96), np.float32)
    for oc2 in range(16):
        for oc1 in range(6):
            for i2 in range(2):
                for j2 in range(2):
                    for di in range(3):
                        for dj in range(3):
                            w2_eff[(i2 * 2 + j2) * 16 + oc2,
                                   oc1 * 16 + (i2 + di) * 4 + (j2 + dj)] = \
                                w2[oc2, oc1, di, dj]

    b1_col = np.repeat(b1, 16).reshape(96, 1)   # row r -> b1[r // 16]
    b2_col = np.tile(b2, 4).reshape(64, 1)      # row r -> b2[r % 16]

    return (jnp.asarray(w1_eff, jnp.bfloat16),
            jnp.asarray(b1_col, jnp.float32),
            jnp.asarray(w2_eff, jnp.bfloat16),
            jnp.asarray(b2_col, jnp.float32),
            jnp.asarray(fcw.reshape(16, 1), jnp.float32),
            jnp.asarray(fcb.reshape(1, 1), jnp.float32))


def _round_up(a, b):
    return -(-a // b) * b


def _choose_tile(n, block_n):
    """Lane-tile selection: multiple of 128, <= block_n, pads the batch only to
    a multiple of 128, prefers tiles that (near-)divide the padded batch, and
    targets >= 2 grid steps when possible so v7x's second TensorCore is used."""
    n128 = _round_up(max(n, 1), 128)
    if n128 <= 128:
        return 128, 128
    cap = max(128, min(block_n, _round_up(-(-n128 // 2), 128)))
    best_tn, best_pad = 128, n128 - n           # tn=128 never adds padding
    tn = 256
    while tn <= cap:
        pad = _round_up(n128, tn) - n
        if pad <= best_pad:                      # ties -> larger tile
            best_tn, best_pad = tn, pad
        tn += 128
    return best_tn, _round_up(n128, best_tn)


def net1_forward(x, prepared, block_n=4096):
    """x: (N, 1, 6, 6) f32 NCHW. Returns (N, 1) f32, matching PyTorch Net1."""
    w1_eff, b1_col, w2_eff, b2_col, fcw_col, fcb_col = prepared
    n = x.shape[0]

    # Row-major flatten only (no HBM transpose); col index = h*6 + w.
    x_flat = x.reshape(n, 36).astype(jnp.float32)

    tn, n_pad = _choose_tile(n, block_n)
    if n_pad != n:
        x_flat = jnp.pad(x_flat, ((0, n_pad - n), (0, 0)))

    out = pl.pallas_call(
        net1_kernel,
        out_shape=jax.ShapeDtypeStruct((1, n_pad), jnp.float32),
        grid=(n_pad // tn,),
        in_specs=[
            pl.BlockSpec((tn, 36), lambda i: (i, 0)),    # x tile (pipelined)
            pl.BlockSpec((96, 36), lambda i: (0, 0)),    # conv1 matrix (bf16)
            pl.BlockSpec((96, 1), lambda i: (0, 0)),     # conv1 bias
            pl.BlockSpec((64, 96), lambda i: (0, 0)),    # conv2 matrix (bf16)
            pl.BlockSpec((64, 1), lambda i: (0, 0)),     # conv2 bias
            pl.BlockSpec((16, 1), lambda i: (0, 0)),     # fc weight
            pl.BlockSpec((1, 1), lambda i: (0, 0)),      # fc bias
        ],
        out_specs=pl.BlockSpec((1, tn), lambda i: (0, i)),
        compiler_params=pltpu.CompilerParams(
            dimension_semantics=("parallel",)),
    )(x_flat, w1_eff, b1_col, w2_eff, b2_col, fcw_col, fcb_col)

    return out[0, :n].reshape(n, 1)


def net1_reference(x, params):
    """Pure-JAX reference of the PyTorch forward (high precision, for checks)."""
    w1, b1, w2, b2, fcw, fcb = params
    dn = ("NCHW", "OIHW", "NCHW")
    hp = lax.Precision.HIGHEST
    y = lax.conv_general_dilated(x, w1, (1, 1), "VALID",
                                 dimension_numbers=dn, precision=hp)
    y = jnp.maximum(y + b1[None, :, None, None], 0.0)
    y = lax.conv_general_dilated(y, w2, (1, 1), "VALID",
                                 dimension_numbers=dn, precision=hp)
    y = jnp.maximum(y + b2[None, :, None, None], 0.0)
    y = lax.reduce_window(y, -jnp.inf, lax.max, (1, 1, 2, 2), (1, 1, 2, 2), "VALID")
    y = y.reshape(y.shape[0], -1)
    return jnp.dot(y, fcw.T, precision=hp) + fcb


def init_params(key):
    k1, k2, k3, k4, k5, k6 = jax.random.split(key, 6)
    w1 = jax.random.normal(k1, (6, 1, 3, 3), jnp.float32) * 0.3
    b1 = jax.random.normal(k2, (6,), jnp.float32) * 0.1
    w2 = jax.random.normal(k3, (16, 6, 3, 3), jnp.float32) * 0.1
    b2 = jax.random.normal(k4, (16,), jnp.float32) * 0.1
    fcw = jax.random.normal(k5, (1, 16), jnp.float32) * 0.2
    fcb = jax.random.normal(k6, (1,), jnp.float32) * 0.1
    return (w1, b1, w2, b2, fcw, fcb)


if __name__ == "__main__":
    key = jax.random.PRNGKey(0)
    kx, kp = jax.random.split(key)
    batch = 2
    x = jax.random.normal(kx, (batch, 1, 6, 6), jnp.float32)
    params = init_params(kp)

    prepared = prepare_net1_params(params)          # one-time, outside jit
    forward = jax.jit(lambda xs: net1_forward(xs, prepared))

    out = jax.block_until_ready(forward(x))
    assert out.shape == (batch, 1), out.shape

    ref = jax.block_until_ready(net1_reference(x, params))
    # Kernel uses single-pass bf16 MXU matmuls (f32 accumulation); compare to
    # the HIGHEST-precision reference with a bf16-appropriate tolerance.
    assert jnp.allclose(out, ref, rtol=2e-2, atol=2e-2), (out, ref)

    print("KERNEL_OK")
</pallas_src>

<mosaic_0001>
module attributes {stable_mosaic.version = 11 : i64} {
  func.func @net1_kernel(%arg0: i32, %arg1: memref<128x36xf32, #tpu.memory_space<vmem>>, %arg2: memref<96x36xbf16, #tpu.memory_space<vmem>>, %arg3: memref<96x1xf32, #tpu.memory_space<vmem>>, %arg4: memref<64x96xbf16, #tpu.memory_space<vmem>>, %arg5: memref<64x1xf32, #tpu.memory_space<vmem>>, %arg6: memref<16x1xf32, #tpu.memory_space<vmem>>, %arg7: memref<1x1xf32, #tpu.memory_space<vmem>>, %arg8: memref<1x128xf32, #tpu.memory_space<vmem>>) attributes {dimension_semantics = [#tpu.dimension_semantics<parallel>], iteration_bounds = array<i64: 1>, scalar_prefetch = 0 : i64, scratch_operands = 0 : i64, tpu.core_type = #tpu.core_type<tc>, window_params = [{transform_indices = @transform_0, window_bounds = array<i64: 128, 36>}, {pipeline_mode = #tpu.pipeline_mode<synchronous>, transform_indices = @transform_1, window_bounds = array<i64: 96, 36>}, {pipeline_mode = #tpu.pipeline_mode<synchronous>, transform_indices = @transform_2, window_bounds = array<i64: 96, 1>}, {pipeline_mode = #tpu.pipeline_mode<synchronous>, transform_indices = @transform_3, window_bounds = array<i64: 64, 96>}, {pipeline_mode = #tpu.pipeline_mode<synchronous>, transform_indices = @transform_4, window_bounds = array<i64: 64, 1>}, {pipeline_mode = #tpu.pipeline_mode<synchronous>, transform_indices = @transform_5, window_bounds = array<i64: 16, 1>}, {pipeline_mode = #tpu.pipeline_mode<synchronous>, transform_indices = @transform_6, window_bounds = array<i64: 1, 1>}, {transform_indices = @transform_7, window_bounds = array<i64: 1, 128>}]} {
    %c0 = arith.constant 0 : index
    %c0_0 = arith.constant 0 : index
    %0 = vector.load %arg1[%c0, %c0_0] : memref<128x36xf32, #tpu.memory_space<vmem>>, vector<128x36xf32>
    %1 = arith.truncf %0 : vector<128x36xf32> to vector<128x36xbf16>
    %c0_1 = arith.constant 0 : index
    %c0_2 = arith.constant 0 : index
    %2 = vector.load %arg2[%c0_1, %c0_2] : memref<96x36xbf16, #tpu.memory_space<vmem>>, vector<96x36xbf16>
    %cst = arith.constant dense<0.000000e+00> : vector<96x128xf32>
    %3 = tpu.matmul %2, %1, %cst {dimension_numbers = #tpu.dot_dimension_numbers<[1], [1], [0], [0], [0, 0, 1, 0], [], []>} : vector<96x36xbf16>, vector<128x36xbf16>, vector<96x128xf32> -> vector<96x128xf32>
    %c0_3 = arith.constant 0 : index
    %c0_4 = arith.constant 0 : index
    %4 = vector.load %arg3[%c0_3, %c0_4] : memref<96x1xf32, #tpu.memory_space<vmem>>, vector<96x1xf32>
    %5 = vector.broadcast %4 : vector<96x1xf32> to vector<96x128xf32>
    %6 = arith.addf %3, %5 : vector<96x128xf32>
    %cst_5 = arith.constant 0.000000e+00 : f32
    %7 = vector.broadcast %cst_5 : f32 to vector<96x128xf32>
    %8 = arith.maximumf %6, %7 : vector<96x128xf32>
    %9 = arith.truncf %8 : vector<96x128xf32> to vector<96x128xbf16>
    %c0_6 = arith.constant 0 : index
    %c0_7 = arith.constant 0 : index
    %10 = vector.load %arg4[%c0_6, %c0_7] : memref<64x96xbf16, #tpu.memory_space<vmem>>, vector<64x96xbf16>
    %cst_8 = arith.constant dense<0.000000e+00> : vector<64x128xf32>
    %11 = tpu.matmul %10, %9, %cst_8 {dimension_numbers = #tpu.dot_dimension_numbers<[1], [0], [0], [1], [0, 0, 1, 1], [], []>} : vector<64x96xbf16>, vector<96x128xbf16>, vector<64x128xf32> -> vector<64x128xf32>
    %c0_9 = arith.constant 0 : index
    %c0_10 = arith.constant 0 : index
    %12 = vector.load %arg5[%c0_9, %c0_10] : memref<64x1xf32, #tpu.memory_space<vmem>>, vector<64x1xf32>
    %13 = vector.broadcast %12 : vector<64x1xf32> to vector<64x128xf32>
    %14 = arith.addf %11, %13 : vector<64x128xf32>
    %cst_11 = arith.constant 0.000000e+00 : f32
    %15 = vector.broadcast %cst_11 : f32 to vector<64x128xf32>
    %16 = arith.maximumf %14, %15 : vector<64x128xf32>
    %17 = vector.extract_strided_slice %16 {offsets = [0, 0], sizes = [16, 128], strides = [1, 1]} : vector<64x128xf32> to vector<16x128xf32>
    %18 = vector.extract_strided_slice %16 {offsets = [16, 0], sizes = [16, 128], strides = [1, 1]} : vector<64x128xf32> to vector<16x128xf32>
    %19 = arith.maximumf %17, %18 : vector<16x128xf32>
    %20 = vector.extract_strided_slice %16 {offsets = [32, 0], sizes = [16, 128], strides = [1, 1]} : vector<64x128xf32> to vector<16x128xf32>
    %21 = vector.extract_strided_slice %16 {offsets = [48, 0], sizes = [16, 128], strides = [1, 1]} : vector<64x128xf32> to vector<16x128xf32>
    %22 = arith.maximumf %20, %21 : vector<16x128xf32>
    %23 = arith.maximumf %19, %22 : vector<16x128xf32>
    %c0_12 = arith.constant 0 : index
    %c0_13 = arith.constant 0 : index
    %24 = vector.load %arg6[%c0_12, %c0_13] : memref<16x1xf32, #tpu.memory_space<vmem>>, vector<16x1xf32>
    %25 = vector.broadcast %24 : vector<16x1xf32> to vector<16x128xf32>
    %26 = arith.mulf %25, %23 : vector<16x128xf32>
    %cst_14 = arith.constant dense<0.000000e+00> : vector<128xf32>
    %27 = vector.multi_reduction <add>, %26, %cst_14 [0] : vector<16x128xf32> to vector<128xf32>
    %28 = vector.shape_cast %27 : vector<128xf32> to vector<1x128xf32>
    %c0_15 = arith.constant 0 : index
    %c0_16 = arith.constant 0 : index
    %29 = vector.load %arg7[%c0_15, %c0_16] : memref<1x1xf32, #tpu.memory_space<vmem>>, vector<1x1xf32>
    %30 = vector.broadcast %29 : vector<1x1xf32> to vector<1x128xf32>
    %31 = arith.addf %28, %30 : vector<1x128xf32>
    %c0_17 = arith.constant 0 : index
    %c0_18 = arith.constant 0 : index
    %32 = vector.load %arg8[%c0_17, %c0_18] : memref<1x128xf32, #tpu.memory_space<vmem>>, vector<1x128xf32>
    tpu.vector_store %arg8[%c0_17, %c0_18], %31 {strides = array<i32>} : memref<1x128xf32, #tpu.memory_space<vmem>>, vector<1x128xf32>,
    return
  }
  func.func @transform_0(%arg0: i32) -> (i32, i32) {
    %c0_i32 = arith.constant 0 : i32
    %c0_i32_0 = arith.constant 0 : i32
    return %arg0, %c0_i32 : i32, i32
  }
  func.func @transform_1(%arg0: i32) -> (i32, i32) {
    %c0_i32 = arith.constant 0 : i32
    %c0_i32_0 = arith.constant 0 : i32
    %c0_i32_1 = arith.constant 0 : i32
    return %c0_i32, %c0_i32_0 : i32, i32
  }
  func.func @transform_2(%arg0: i32) -> (i32, i32) {
    %c0_i32 = arith.constant 0 : i32
    %c0_i32_0 = arith.constant 0 : i32
    %c0_i32_1 = arith.constant 0 : i32
    return %c0_i32, %c0_i32_0 : i32, i32
  }
  func.func @transform_3(%arg0: i32) -> (i32, i32) {
    %c0_i32 = arith.constant 0 : i32
    %c0_i32_0 = arith.constant 0 : i32
    %c0_i32_1 = arith.constant 0 : i32
    return %c0_i32, %c0_i32_0 : i32, i32
  }
  func.func @transform_4(%arg0: i32) -> (i32, i32) {
    %c0_i32 = arith.constant 0 : i32
    %c0_i32_0 = arith.constant 0 : i32
    %c0_i32_1 = arith.constant 0 : i32
    return %c0_i32, %c0_i32_0 : i32, i32
  }
  func.func @transform_5(%arg0: i32) -> (i32, i32) {
    %c0_i32 = arith.constant 0 : i32
    %c0_i32_0 = arith.constant 0 : i32
    %c0_i32_1 = arith.constant 0 : i32
    return %c0_i32, %c0_i32_0 : i32, i32
  }
  func.func @transform_6(%arg0: i32) -> (i32, i32) {
    %c0_i32 = arith.constant 0 : i32
    %c0_i32_0 = arith.constant 0 : i32
    %c0_i32_1 = arith.constant 0 : i32
    return %c0_i32, %c0_i32_0 : i32, i32
  }
  func.func @transform_7(%arg0: i32) -> (i32, i32) {
    %c0_i32 = arith.constant 0 : i32
    %c0_i32_0 = arith.constant 0 : i32
    return %c0_i32, %arg0 : i32, i32
  }
}

</mosaic_0001>

<bundles_post_ra>
// kernel: _lambda_.1
= control target key start
LH: loop header
LB: loop body
LE: loop exit
PB: predicated region body
PF: predicated region fallthrough
CT: control target
= control target key end

     0   :  { %s902_s0 = inlined_call_operand.vmem [shape: f32[128,36], index: 0, kind: input, shape index: {}]   ;;  %s903_s1 = inlined_call_operand.hbm [shape: bf16[96,36], index: 1, kind: input, shape index: {}]   ;;  %s904_s2 = inlined_call_operand.vmem [shape: f32[96,1], index: 2, kind: input, shape index: {}]   ;;  %s905_s3 = inlined_call_operand.hbm [shape: bf16[64,96], index: 3, kind: input, shape index: {}]   ;;  %s906_s4 = inlined_call_operand.vmem [shape: f32[64,1], index: 4, kind: input, shape index: {}]   ;;  %s907_s5 = inlined_call_operand.vmem [shape: f32[16,1], index: 5, kind: input, shape index: {}]   ;;  %s908_s6 = inlined_call_operand.<no memory space> [shape: f32[1,1], index: 6, kind: input, shape index: {}]   ;;  %s909_s7 = inlined_call_operand.vmem [shape: f32[1,128], index: 7, kind: output, shape index: {}]  }
   0x1   :  { %v12_v0 = vstv %s908_s6 }
   0x2   :  { %13 = vst [vmem:[#allocation2] sm:$0x1] %v12_v0 }
   0x3   :  { %14 = vsyncpa [#allocation4], 0 }
   0x4   :  { %15 = vsyncpa [#allocation6], 0  ;;  %s705_s26 = smov [#allocation3]  }
   0x5   :  { %s23_s27 = sshll.u32 %s705_s26, 4  ;;  %s24_s27 = int_to_ptr.vmem [resolvable:$true] %s23_s27 }
   0x6   :  { %s669_s28 = scalar_lea.vmem %s24_s27, 768  ;;  %p674_p1 = scmp.lt.s32.totalorder %s24_s27, %s24_s27 }
   0x7   :  { %p670_p0 = scmp.ne.s32.totalorder %s24_s27, %s669_s28  ;;  %p675_p2 = scmp.lt.s32.totalorder %s669_s28, %s669_s28 }
   0x9   :  { %p676_p3 = por %p675_p2, %p674_p1 }
   0xb   :  { %p677_p4 = pnand %p676_p3, %p670_p0 }
   0xd   :  { %680 = shalt.err (!%p677_p4)
}
   0xe   :  { %s706_s29 = smov 64   ;;  %s707_s30 = smov 4  }
   0xf   :  { %29 = dma.hbm_to_vmem [thread:$0]  %s903_s1, 768, %s24_s27, [#allocation4], %s706_s29, %s706_s29, %s707_s30  }
  0x10   :  { %s708_s6 = smov [#allocation5]  }
  0x11   :  { %s37_s10 = sshll.u32 %s708_s6, 4  ;;  %s38_s10 = int_to_ptr.vmem [resolvable:$true] %s37_s10 }
  0x12   :  { %s689_s11 = scalar_lea.vmem %s38_s10, 512  ;;  %p694_p6 = scmp.lt.s32.totalorder %s38_s10, %s38_s10 }
  0x13   :  { %p690_p5 = scmp.ne.s32.totalorder %s38_s10, %s689_s11  ;;  %p695_p7 = scmp.lt.s32.totalorder %s689_s11, %s689_s11 }
  0x15   :  { %p696_p8 = por %p695_p7, %p694_p6 }
  0x17   :  { %p697_p9 = pnand %p696_p8, %p690_p5 }
  0x19   :  { %700 = shalt.err (!%p697_p9)
}
  0x1a   :  { %43 = dma.hbm_to_vmem [thread:$0]  %s905_s3, 512, %s38_s10, [#allocation6], %s706_s29, %s706_s29, %s707_s30  }
  0x1b   :  { %701 = dma.done.wait [#allocation4], 768  }
  0x1c   :  { %702 = vsyncadd [#allocation4], 4294966528 }
  0x1d   :  { %703 = dma.done.wait [#allocation6], 512  }
  0x1e   :  { %704 = vsyncadd [#allocation6], 4294966784  ;;  %v709_v1 = vmov 0   ;;  %v71_v2 = vld [vmem:[%s902_s0 + $0x70] sm:$0xff]  ;;  %v72_v3 = vld [vmem:[%s902_s0 + $0x78] sm:$0xff]  ;;  %vm195_vm0 = vcmask 293888  }
  0x1f   :  { %649 = vset.pattern.permute.xlu0 %v709_v1  ;;  %650 = vset.pattern.permute.xlu1 %v709_v1  ;;  %v69_v4 = vld [vmem:[%s902_s0 + $0x60] sm:$0xff]  ;;  %v80_v5 = vpack.c.bf16 %v72_v3, %v71_v2  ;;  %v70_v6 = vld [vmem:[%s902_s0 + $0x68] sm:$0xff]  ;;  %v67_v9 = vld [vmem:[%s902_s0 + $0x50] sm:$0xff]  ;;  %vm413_vm1 = vcmask 785408  }
  0x20   :  { %v79_v7 = vpack.c.bf16 %v70_v6, %v69_v4  ;;  %v68_v10 = vld [vmem:[%s902_s0 + $0x58] sm:$0xff]  ;;  %v651_v11 = vld [vmem:[#allocation3] sm:$0xff]   ;;  %v103_v14 = vld [vmem:[%s904_s2 + $0x50] sm:$0xff] }
  0x21   :  { %636 = vmatprep.subr.msk.bf16.mxu0 %vm195_vm0, %v80_v5  ;;  %v236_v8 = vsel %vm195_vm0, %v80_v5, 0  ;;  %604 = vmatprep.mubr.msk.bf16.mxu0 %vm195_vm0, %v651_v11  ;;  %v78_v13 = vpack.c.bf16 %v68_v10, %v67_v9  ;;  %v101_v15 = vld [vmem:[%s904_s2 + $0x40] sm:$0xff]  ;;  %v104_v16 = vld [vmem:[%s904_s2 + $0x58] sm:$0xff]  ;;  %v66_v18 = vld [vmem:[%s902_s0 + $0x48] sm:$0xff] }
  0x22   :  { %589 = vmatpush3.bf16.xpose.msra.mxu0 %v236_v8  ;;  %v233_v12 = vsel %vm195_vm0, %v79_v7, 0  ;;  %157 = vperm.xlu0 %649, %v103_v14   ;;  %v65_v17 = vld [vmem:[%s902_s0 + $0x40] sm:$0xff]  ;;  %v102_v19 = vld [vmem:[%s904_s2 + $0x48] sm:$0xff]  ;;  %v99_v22 = vld [vmem:[%s904_s2 + $0x30] sm:$0xff] }
  0x23   :  { %637 = vmatprep.subr.msk.bf16.mxu0 %vm195_vm0, %v79_v7  ;;  %147 = vperm.xlu1 %650, %v101_v15   ;;  %v230_v20 = vsel %vm195_vm0, %v78_v13, 0  ;;  %v77_v21 = vpack.c.bf16 %v66_v18, %v65_v17  ;;  %v100_v23 = vld [vmem:[%s904_s2 + $0x38] sm:$0xff]  ;;  %v97_v24 = vld [vmem:[%s904_s2 + $0x20] sm:$0xff]  ;;  %v63_v25 = vld [vmem:[%s902_s0 + $0x30] sm:$0xff] }
  0x24   :  { %v64_v26 = vld [vmem:[%s902_s0 + $0x38] sm:$0xff]  ;;  %v98_v27 = vld [vmem:[%s904_s2 + $0x28] sm:$0xff]  ;;  %v95_v30 = vld [vmem:[%s904_s2 + $0x10] sm:$0xff] }
  0x25   :  { %v227_v28 = vsel %vm195_vm0, %v77_v21, 0  ;;  %v76_v29 = vpack.c.bf16 %v64_v26, %v63_v25  ;;  %v96_v31 = vld [vmem:[%s904_s2 + $0x18] sm:$0xff]  ;;  %v93_v32 = vld [vmem:[%s904_s2] sm:$0xff]  ;;  %v62_v34 = vld [vmem:[%s902_s0 + $0x28] sm:$0xff] }
  0x26   :  { %162 = vperm.xlu0 %649, %v104_v16   ;;  %v61_v33 = vld [vmem:[%s902_s0 + $0x20] sm:$0xff]  ;;  %v94_v35 = vld [vmem:[%s904_s2 + $0x8] sm:$0xff]  ;;  %v347_v40 = vld [vmem:[%s906_s4 + $0x10] sm:$0xff] }
  0x27   :  { %152 = vperm.xlu1 %650, %v102_v19   ;;  %v224_v36 = vsel %vm195_vm0, %v76_v29, 0  ;;  %v75_v37 = vpack.c.bf16 %v62_v34, %v61_v33  ;;  %v345_v38 = vld [vmem:[%s906_s4] sm:$0xff]  ;;  %v346_v39 = vld [vmem:[%s906_s4 + $0x8] sm:$0xff]  ;;  %v59_v41 = vld [vmem:[%s902_s0 + $0x10] sm:$0xff] }
  0x28   :  { %v60_v42 = vld [vmem:[%s902_s0 + $0x18] sm:$0xff]  ;;  %v349_v46 = vld [vmem:[%s906_s4 + $0x20] sm:$0xff]  ;;  %v350_v47 = vld [vmem:[%s906_s4 + $0x28] sm:$0xff] }
  0x29   :  { %v348_v43 = vld [vmem:[%s906_s4 + $0x18] sm:$0xff]  ;;  %v221_v44 = vsel %vm195_vm0, %v75_v37, 0  ;;  %v74_v45 = vpack.c.bf16 %v60_v42, %v59_v41  ;;  %v351_v48 = vld [vmem:[%s906_s4 + $0x30] sm:$0xff]  ;;  %v57_v49 = vld [vmem:[%s902_s0] sm:$0xff] }
  0x2a   :  { %591 = vmatpush3.bf16.xpose.msra.mxu0 %v233_v12  ;;  %137 = vperm.xlu0 %649, %v99_v22   ;;  %v58_v50 = vld [vmem:[%s902_s0 + $0x8] sm:$0xff]  ;;  %v352_v51 = vld [vmem:[%s906_s4 + $0x38] sm:$0xff]  ;;  %v505_v54 = vld [vmem:[%s907_s5] sm:$0xff] }
  0x2b   :  { %638 = vmatprep.subr.msk.bf16.mxu0 %vm195_vm0, %v78_v13  ;;  %142 = vperm.xlu1 %650, %v100_v23   ;;  %v218_v52 = vsel %vm195_vm0, %v74_v45, 0  ;;  %v73_v53 = vpack.c.bf16 %v58_v50, %v57_v49  ;;  %v506_v55 = vld [vmem:[%s907_s5 + $0x8] sm:$0xff]  ;;  %v526_v56 = vld [vmem:[#allocation2] sm:$0x1]  ;;  %v653_v59 = vld [vmem:[#allocation3 + $0x10] sm:$0xff]  }
  0x2c   :  { %v652_v58 = vld [vmem:[#allocation3 + $0x8] sm:$0xff]   ;;  %v654_v60 = vld [vmem:[#allocation3 + $0x18] sm:$0xff]   ;;  %v655_v61 = vld [vmem:[#allocation3 + $0x20] sm:$0xff]  }
  0x2d   :  { %v215_v57 = vsel %vm195_vm0, %v73_v53, 0  ;;  %v656_v62 = vld [vmem:[#allocation3 + $0x28] sm:$0xff]   ;;  %v657_v63 = vld [vmem:[#allocation5] sm:$0xff]  }
  0x2e   :  { %127 = vperm.xlu0 %649, %v97_v24   ;;  %628 = vmatprep.mubr.msk.bf16.mxu1 %vm413_vm1, %v657_v63 }
  0x2f   :  { %132 = vperm.xlu1 %650, %v98_v27  }
  0x32   :  { %593 = vmatpush3.bf16.xpose.msra.mxu0 %v230_v20  ;;  %117 = vperm.xlu0 %649, %v95_v30  }
  0x33   :  { %639 = vmatprep.subr.msk.bf16.mxu0 %vm195_vm0, %v77_v21  ;;  %122 = vperm.xlu1 %650, %v96_v31  }
  0x36   :  { %107 = vperm.xlu0 %649, %v93_v32  }
  0x37   :  { %112 = vperm.xlu1 %650, %v94_v35  }
  0x3a   :  { %595 = vmatpush3.bf16.xpose.msra.mxu0 %v227_v28  ;;  %355 = vperm.xlu0 %649, %v345_v38  }
  0x3b   :  { %640 = vmatprep.subr.msk.bf16.mxu0 %vm195_vm0, %v76_v29  ;;  %360 = vperm.xlu1 %650, %v346_v39  }
  0x3e   :  { %365 = vperm.xlu0 %649, %v347_v40  }
  0x3f   :  { %370 = vperm.xlu1 %650, %v348_v43  }
  0x42   :  { %597 = vmatpush3.bf16.xpose.msra.mxu0 %v224_v36  ;;  %375 = vperm.xlu0 %649, %v349_v46  }
  0x43   :  { %641 = vmatprep.subr.msk.bf16.mxu0 %vm195_vm0, %v75_v37  ;;  %380 = vperm.xlu1 %650, %v350_v47  }
  0x46   :  { %385 = vperm.xlu0 %649, %v351_v48  }
  0x47   :  { %390 = vperm.xlu1 %650, %v352_v51  }
  0x4a   :  { %599 = vmatpush3.bf16.xpose.msra.mxu0 %v221_v44  ;;  %509 = vperm.xlu0 %649, %v505_v54   ;;  %v658_v54 = vld [vmem:[#allocation5 + $0x8] sm:$0xff]  }
  0x4b   :  { %642 = vmatprep.subr.msk.bf16.mxu0 %vm195_vm0, %v74_v45  ;;  %514 = vperm.xlu1 %650, %v506_v55   ;;  %v659_v55 = vld [vmem:[#allocation5 + $0x10] sm:$0xff]  }
  0x4e   :  { %529 = vperm.xlu0 %649, %v526_v56   ;;  %v660_v56 = vld [vmem:[#allocation5 + $0x18] sm:$0xff]  }
  0x52   :  { %601 = vmatpush3.bf16.xpose.msra.mxu0 %v218_v52 }
  0x53   :  { %643 = vmatprep.subr.msk.bf16.mxu0 %vm195_vm0, %v73_v53 }
  0x5a   :  { %603 = vmatpush3.bf16.xpose.msra.mxu0 %v215_v57 }
  0x61   :  { %605 = vmatmul.mubr.msk.bf16.vlgmr.msra.gmra.mxu0 %vm195_vm0, %v652_v58 }
  0x62   :  { %608 = vmatprep.mubr.msk.bf16.mxu0 %vm195_vm0, %v653_v59 }
  0x69   :  { %609 = vmatmul.mubr.msk.bf16.gmra.mxu0 %vm195_vm0, %v654_v60 }
  0x6a   :  { %612 = vmatprep.mubr.msk.bf16.mxu0 %vm195_vm0, %v655_v61 }
  0x71   :  { %613 = vmatmul.mubr.msk.bf16.gmra.mxu0 %vm195_vm0, %v656_v62 }
  0x9d   :  { %v158_v4 = vpop.permute.xlu0 %157 }
  0x9e   :  { %v148_v2 = vpop.permute.xlu1 %147 }
  0xa1   :  { %v163_v9 = vpop.permute.xlu0 %162 }
  0xa2   :  { %v153_v7 = vpop.permute.xlu1 %152 }
  0xa5   :  { %v138_v14 = vpop.permute.xlu0 %137 }
  0xa6   :  { %v143_v12 = vpop.permute.xlu1 %142 }
  0xa9   :  { %v128_v26 = vpop.permute.xlu0 %127 }
  0xaa   :  { %v133_v20 = vpop.permute.xlu1 %132 }
  0xad   :  { %v118_v37 = vpop.permute.xlu0 %117 }
  0xae   :  { %v123_v34 = vpop.permute.xlu1 %122 }
  0xb1   :  { %v108_v47 = vpop.permute.xlu0 %107 }
  0xb2   :  { %v113_v43 = vpop.permute.xlu1 %112 }
  0xb5   :  { %v356_v57 = vpop.permute.xlu0 %355 }
  0xb6   :  { %v361_v58 = vpop.permute.xlu1 %360 }
  0xb9   :  { %v366_v59 = vpop.permute.xlu0 %365 }
  0xba   :  { %v371_v60 = vpop.permute.xlu1 %370 }
  0xbd   :  { %v376_v62 = vpop.permute.xlu0 %375 }
 0x121   :  { %v606_v0 = vpop.f32.mrf.mxu0 }
 0x122   :  { %v281_v41 = vadd.f32 %v606_v0, %v118_v37 }
 0x123   :  { %v272_v1 = vpop.f32.mrf.mxu0 }
 0x124   :  { %v321_v48 = vmax.f32 %v281_v41, 0.0  ;;  %v273_v49 = vadd.f32 %v272_v1, %v108_v47  ;;  %v381_v1 = vpop.permute.xlu1 %380 }
 0x125   :  { %v607_v3 = vpop.f32.mrf.mxu0 }
 0x126   :  { %v284_v38 = vadd.f32 %v607_v3, %v123_v34  ;;  %v319_v52 = vmax.f32 %v273_v49, 0.0  ;;  %v386_v3 = vpop.permute.xlu0 %385 }
 0x127   :  { %v275_v5 = vpop.f32.mrf.mxu0 }
 0x128   :  { %v322_v44 = vmax.f32 %v284_v38, 0.0  ;;  %v276_v45 = vadd.f32 %v275_v5, %v113_v43 }
 0x129   :  { %v610_v6 = vpop.f32.mrf.mxu0 }
 0x12a   :  { %v297_v27 = vadd.f32 %v610_v6, %v138_v14  ;;  %v332_v50 = vpack.c.bf16 %v322_v44, %v321_v48  ;;  %v320_v51 = vmax.f32 %v276_v45, 0.0 }
 0x12b   :  { %v288_v8 = vpop.f32.mrf.mxu0 }
 0x12c   :  { %v325_v35 = vmax.f32 %v297_v27, 0.0  ;;  %v289_v36 = vadd.f32 %v288_v8, %v128_v26  ;;  %v331_v53 = vpack.c.bf16 %v320_v51, %v319_v52 }
 0x12d   :  { %v611_v10 = vpop.f32.mrf.mxu0 }
 0x12e   :  { %v300_v22 = vadd.f32 %v611_v10, %v143_v12  ;;  %v323_v42 = vmax.f32 %v289_v36, 0.0 }
 0x12f   :  { %v291_v11 = vpop.f32.mrf.mxu0 }
 0x130   :  { %v326_v31 = vmax.f32 %v300_v22, 0.0  ;;  %v292_v32 = vadd.f32 %v291_v11, %v133_v20  ;;  %v391_v11 = vpop.permute.xlu1 %390 }
 0x131   :  { %v614_v13 = vpop.f32.mrf.mxu0 }
 0x132   :  { %v313_v16 = vadd.f32 %v614_v13, %v158_v4  ;;  %v334_v39 = vpack.c.bf16 %v326_v31, %v325_v35  ;;  %v324_v40 = vmax.f32 %v292_v32, 0.0  ;;  %v510_v31 = vpop.permute.xlu0 %509  ;;  %v532_v35 = vlaneseq }
 0x133   :  { %v304_v15 = vpop.f32.mrf.mxu0 }
 0x134   :  { %v305_v18 = vadd.f32 %v304_v15, %v148_v2  ;;  %v329_v23 = vmax.f32 %v313_v16, 0.0  ;;  %v333_v46 = vpack.c.bf16 %v324_v40, %v323_v42  ;;  %v515_v32 = vpop.permute.xlu1 %514  ;;  %v533_v38 = vshrl.u32 %v532_v35, 7 }
 0x135   :  { %v615_v17 = vpop.f32.mrf.mxu0 }
 0x136   :  { %v316_v19 = vadd.f32 %v615_v17, %v163_v9  ;;  %v327_v28 = vmax.f32 %v305_v18, 0.0  ;;  %v534_v41 = vsub.s32 0, %v533_v38  ;;  %v530_v43 = vpop.permute.xlu0 %529 }
 0x137   :  { %v307_v21 = vpop.f32.mrf.mxu0 }
 0x138   :  { %v330_v24 = vmax.f32 %v316_v19, 0.0  ;;  %v308_v25 = vadd.f32 %v307_v21, %v153_v7  ;;  %v535_v45 = vrot.slane %v530_v43, %v534_v41 }
 0x13a   :  { %v328_v29 = vmax.f32 %v308_v25, 0.0  ;;  %v336_v30 = vpack.c.bf16 %v330_v24, %v329_v23 }
 0x13c   :  { %v335_v33 = vpack.c.bf16 %v328_v29, %v327_v28  ;;  %616 = vmatprep.subr.bf16.mxu1 %v336_v30 }
 0x13d   :  { %617 = vmatpush3.bf16.msra.mxu1 %v336_v30 }
 0x13e   :  { %618 = vmatprep.subr.bf16.mxu1 %v335_v33 }
 0x141   :  { %619 = vmatpush3.bf16.msra.mxu1 %v335_v33 }
 0x142   :  { %620 = vmatprep.subr.bf16.mxu1 %v334_v39 }
 0x145   :  { %621 = vmatpush3.bf16.msra.mxu1 %v334_v39 }
 0x146   :  { %622 = vmatprep.subr.bf16.mxu1 %v333_v46 }
 0x149   :  { %623 = vmatpush3.bf16.msra.mxu1 %v333_v46 }
 0x14a   :  { %624 = vmatprep.subr.bf16.mxu1 %v332_v50 }
 0x14d   :  { %625 = vmatpush3.bf16.msra.mxu1 %v332_v50 }
 0x14e   :  { %626 = vmatprep.subr.bf16.mxu1 %v331_v53 }
 0x151   :  { %627 = vmatpush3.bf16.msra.mxu1 %v331_v53 }
 0x154   :  { %629 = vmatmul.mubr.msk.bf16.vlgmr.msra.gmra.mxu1 %vm413_vm1, %v658_v54 }
 0x155   :  { %632 = vmatprep.mubr.msk.bf16.mxu1 %vm413_vm1, %v659_v55 }
 0x15c   :  { %633 = vmatmul.mubr.msk.bf16.gmra.mxu1 %vm413_vm1, %v660_v56 }
 0x214   :  { %v630_v61 = vpop.f32.mrf.mxu1 }
 0x215   :  { %v469_v8 = vadd.f32 %v630_v61, %v366_v59 }
 0x216   :  { %v460_v63 = vpop.f32.mrf.mxu1 }
 0x217   :  { %v461_v4 = vadd.f32 %v460_v63, %v356_v57  ;;  %v493_v19 = vmax.f32 %v469_v8, 0.0 }
 0x218   :  { %v631_v0 = vpop.f32.mrf.mxu1 }
 0x219   :  { %v491_v12 = vmax.f32 %v461_v4, 0.0  ;;  %v472_v14 = vadd.f32 %v631_v0, %v371_v60 }
 0x21a   :  { %v463_v2 = vpop.f32.mrf.mxu1 }
 0x21b   :  { %v464_v9 = vadd.f32 %v463_v2, %v361_v58  ;;  %v499_v23 = vmax.f32 %v491_v12, %v493_v19  ;;  %v494_v24 = vmax.f32 %v472_v14, 0.0 }
 0x21c   :  { %v634_v5 = vpop.f32.mrf.mxu1 }
 0x21d   :  { %v485_v6 = vadd.f32 %v634_v5, %v386_v3  ;;  %v492_v20 = vmax.f32 %v464_v9, 0.0 }
 0x21e   :  { %v476_v7 = vpop.f32.mrf.mxu1 }
 0x21f   :  { %v477_v10 = vadd.f32 %v476_v7, %v376_v62  ;;  %v497_v15 = vmax.f32 %v485_v6, 0.0  ;;  %v500_v27 = vmax.f32 %v492_v20, %v494_v24 }
 0x220   :  { %v635_v13 = vpop.f32.mrf.mxu1 }
 0x221   :  { %v495_v16 = vmax.f32 %v477_v10, 0.0  ;;  %v488_v17 = vadd.f32 %v635_v13, %v391_v11 }
 0x222   :  { %v479_v18 = vpop.f32.mrf.mxu1 }
 0x223   :  { %v501_v21 = vmax.f32 %v495_v16, %v497_v15  ;;  %v480_v22 = vadd.f32 %v479_v18, %v381_v1  ;;  %v498_v25 = vmax.f32 %v488_v17, 0.0 }
 0x225   :  { %v496_v26 = vmax.f32 %v480_v22, 0.0  ;;  %v503_v28 = vmax.f32 %v499_v23, %v501_v21 }
 0x227   :  { %v502_v29 = vmax.f32 %v496_v26, %v498_v25  ;;  %v517_v33 = vmul.f32 %v510_v31, %v503_v28 }
 0x229   :  { %v504_v30 = vmax.f32 %v500_v27, %v502_v29 }
 0x22b   :  { %v518_v34 = vmul.f32 %v515_v32, %v504_v30 }
 0x22d   :  { %v519_v36 = vadd.f32 %v518_v34, %v517_v33 }
 0x22f   :  { %v520_v37 = vrot.slane %v519_v36, 4 }
 0x231   :  { %v521_v39 = vadd.f32 %v520_v37, %v519_v36 }
 0x233   :  { %v522_v40 = vrot.slane %v521_v39, 2 }
 0x235   :  { %v523_v42 = vadd.f32 %v522_v40, %v521_v39 }
 0x237   :  { %v524_v44 = vrot.slane %v523_v42, 1 }
 0x239   :  { %v525_v46 = vadd.f32 %v524_v44, %v523_v42 }
 0x23b   :  { %v536_v47 = vadd.f32 %v535_v45, %v525_v46 }
 0x23d   :  { %537 = vst [vmem:[%s909_s7] sm:$0x1] %v536_v47 }
 0x23e   :  { %542 = vsyncpa [#allocation4], 1 }
 0x23f   :  { %543 = vsyncpa [#allocation6], 1 }

</bundles_post_ra>
